<compile_context>
chip_gen: v7x
topology: tpu7x:2x2x1
jax: 0.10.0
libtpu: 0.0.40
codegen_flags: <defaults>
</compile_context>

<pallas_src>
import functools

import jax
import jax.numpy as jnp
from jax import lax
from jax.experimental import pallas as pl
from jax.experimental.pallas import tpu as pltpu

_EPS_SQ = 1e-24  # (F.normalize eps = 1e-12)^2, applied to the squared norm.


def _nt_xent_tiled_kernel(inv_t, zq_ref, zp_ref, zk_ref, out_ref,
                          zqs_ref, m_ref, l_ref, diag_ref, pos_ref):
    """Online (flash-style) masked-free log-sum-exp over key tiles."""
    ki = pl.program_id(1)
    nk = pl.num_programs(1)

    @pl.when(ki == 0)
    def _init():
        zq = zq_ref[...]                                        # (tq, Dp)
        sq_q = jnp.sum(zq * zq, axis=1, keepdims=True)          # (tq, 1)
        inv_nq = lax.rsqrt(jnp.maximum(sq_q, _EPS_SQ))          # EUP, not VPU div
        # 1/temperature folded into the (cheap) q-side scaling.
        zqs_ref[...] = zq * (inv_nq * inv_t)
        # Self-similarity logit, exact even for eps-clamped zero rows.
        diag_ref[...] = (sq_q * inv_t) * (inv_nq * inv_nq)
        # Positive-pair logit: partner rows arrive as their own tile (zp_ref).
        zp = zp_ref[...]
        sq_p = jnp.sum(zp * zp, axis=1, keepdims=True)
        inv_np = lax.rsqrt(jnp.maximum(sq_p, _EPS_SQ))
        pos_ref[...] = (jnp.sum(zq * zp, axis=1, keepdims=True)
                        * (inv_nq * inv_np * inv_t))
        m_ref[...] = jnp.full(m_ref.shape, -jnp.inf, dtype=jnp.float32)
        l_ref[...] = jnp.zeros(l_ref.shape, dtype=jnp.float32)

    # Normalize this key tile and accumulate the online LSE (no masks).
    zk = zk_ref[...]                                            # (tk, Dp)
    sq_k = jnp.sum(zk * zk, axis=1, keepdims=True)
    zk_n = zk * lax.rsqrt(jnp.maximum(sq_k, _EPS_SQ))
    s = lax.dot_general(zqs_ref[...], zk_n,                     # (tq, tk) logits
                        dimension_numbers=(((1,), (1,)), ((), ())),
                        preferred_element_type=jnp.float32)
    m_prev = m_ref[...]
    m_new = jnp.maximum(m_prev, jnp.max(s, axis=1, keepdims=True))
    l_ref[...] = (jnp.exp(m_prev - m_new) * l_ref[...]
                  + jnp.sum(jnp.exp(s - m_new), axis=1, keepdims=True))
    m_ref[...] = m_new

    @pl.when(ki == nk - 1)
    def _finalize():
        m = m_ref[...]
        denom = l_ref[...] - jnp.exp(diag_ref[...] - m)         # drop i == m term
        out_ref[...] = (jnp.log(denom) + m) - pos_ref[...]      # per-row loss


def _nt_xent_full_kernel(inv_t, z_ref, loss_ref):
    """Monolithic fallback for small / irregular N (everything in VMEM)."""
    z = z_ref[...]                                              # (2N, Dp)
    n2 = z.shape[0]
    sq = jnp.sum(z * z, axis=1, keepdims=True)
    inv_norm = lax.rsqrt(jnp.maximum(sq, _EPS_SQ))
    zn = z * inv_norm
    zs = zn * inv_t                                             # temperature folded in
    logits = lax.dot_general(zs, zn,
                             dimension_numbers=(((1,), (1,)), ((), ())),
                             preferred_element_type=jnp.float32)
    diag_logit = (sq * inv_t) * (inv_norm * inv_norm)           # (2N, 1)
    row = lax.broadcasted_iota(jnp.int32, (n2, n2), 0)
    col = lax.broadcasted_iota(jnp.int32, (n2, n2), 1)
    pos_mask = col == ((row + n2 // 2) % n2)
    pos = jnp.sum(jnp.where(pos_mask, logits, 0.0), axis=1, keepdims=True)
    m = jnp.max(logits, axis=1, keepdims=True)
    denom = (jnp.sum(jnp.exp(logits - m), axis=1, keepdims=True)
             - jnp.exp(diag_logit - m))                         # exclude self term
    per_row = (jnp.log(denom) + m) - pos
    loss_ref[...] = jnp.sum(per_row, axis=0, keepdims=True) * (1.0 / n2)


def _pick_block(n, max_block):
    """Largest multiple of 8 that divides n and is <= max_block (or None)."""
    best = None
    b = 8
    while b <= min(n, max_block):
        if n % b == 0:
            best = b
        b += 8
    return best


def contrastive_loss_eli5(emb_i, emb_j, temperature=0.5,
                          block_q=256, block_k=512):
    """NT-Xent loss over paired embeddings emb_i, emb_j of shape (N, D)."""
    n, d = emb_i.shape
    assert emb_j.shape == (n, d)
    n2 = 2 * n
    inv_t = 1.0 / float(temperature)

    # Host-side layout plumbing: concat pairs, zero-pad features to 128 lanes.
    # Zero-padding D changes neither row norms nor dot products.
    z = jnp.concatenate([emb_i, emb_j], axis=0).astype(jnp.float32)  # (2N, D)
    d_pad = max(128, ((d + 127) // 128) * 128)
    if d_pad != d:
        z = jnp.pad(z, ((0, 0), (0, d_pad - d)))

    tq = _pick_block(n, block_q)    # q tile: must divide N (partner alignment)
    tk = _pick_block(n2, block_k)   # k tile: must divide 2N

    if tq is None or tk is None:
        # Fallback: monolithic kernel (irregular / tiny N only).
        approx_vmem = 4 * (3 * n2 * d_pad + 6 * n2 * n2) + (2 << 20)
        vmem_limit = int(min(64 * 1024 * 1024,
                             max(32 * 1024 * 1024, approx_vmem)))
        out = pl.pallas_call(
            functools.partial(_nt_xent_full_kernel, inv_t),
            out_shape=jax.ShapeDtypeStruct((1, 1), jnp.float32),
            in_specs=[pl.BlockSpec(memory_space=pltpu.MemorySpace.VMEM)],
            out_specs=pl.BlockSpec(memory_space=pltpu.MemorySpace.VMEM),
            compiler_params=pltpu.CompilerParams(vmem_limit_bytes=vmem_limit),
        )(z)
        return out[0, 0]

    n_q, n_k = n2 // tq, n2 // tk
    p_off = n // tq                 # partner tile offset: (i + N) mod 2N

    approx_vmem = (4 * (2 * (2 * tq * d_pad + tk * d_pad) + tq * d_pad
                        + tq * tk + 8 * tq) + (2 << 20))
    vmem_limit = int(min(64 * 1024 * 1024, max(32 * 1024 * 1024, approx_vmem)))

    per_row = pl.pallas_call(
        functools.partial(_nt_xent_tiled_kernel, inv_t),
        out_shape=jax.ShapeDtypeStruct((n2, 1), jnp.float32),
        grid_spec=pltpu.PrefetchScalarGridSpec(
            num_scalar_prefetch=0,
            grid=(n_q, n_k),
            in_specs=[
                pl.BlockSpec((tq, d_pad), lambda qi, ki: (qi, 0)),         # zq
                pl.BlockSpec((tq, d_pad),
                             lambda qi, ki: ((qi + p_off) % n_q, 0)),       # partner
                pl.BlockSpec((tk, d_pad), lambda qi, ki: (ki, 0)),          # zk
            ],
            out_specs=pl.BlockSpec((tq, 1), lambda qi, ki: (qi, 0)),
            scratch_shapes=[
                pltpu.VMEM((tq, d_pad), jnp.float32),   # inv_t-scaled normalized q
                pltpu.VMEM((tq, 1), jnp.float32),       # running max
                pltpu.VMEM((tq, 1), jnp.float32),       # running sum of exp
                pltpu.VMEM((tq, 1), jnp.float32),       # self-similarity logit
                pltpu.VMEM((tq, 1), jnp.float32),       # positive-pair logit
            ]),
        compiler_params=pltpu.CompilerParams(
            dimension_semantics=("parallel", "arbitrary"),
            vmem_limit_bytes=vmem_limit),
    )(z, z, z)
    # Tiny final mean over the 2N per-row losses (megacore-safe).
    return jnp.sum(per_row) / n2


def nt_xent_ref(emb_i, emb_j, temperature):
    """Pure-JAX reference mirroring the PyTorch ContrastiveLossELI5.forward."""
    zi = emb_i / jnp.maximum(jnp.linalg.norm(emb_i, axis=1, keepdims=True), 1e-12)
    zj = emb_j / jnp.maximum(jnp.linalg.norm(emb_j, axis=1, keepdims=True), 1e-12)
    z = jnp.concatenate([zi, zj], axis=0)
    n2 = z.shape[0]
    logits = (z @ z.T) / temperature
    exp_l = jnp.exp(logits)
    not_i = 1.0 - jnp.eye(n2, dtype=exp_l.dtype)
    denom = jnp.sum(not_i * exp_l, axis=1)
    partner = (jnp.arange(n2) + n2 // 2) % n2
    num = exp_l[jnp.arange(n2), partner]
    return jnp.sum(-jnp.log(num / denom)) / n2


if __name__ == "__main__":
    temperature = 0.5
    key = jax.random.PRNGKey(0)

    cases = [
        (8, 32, {}),                               # demo size -> tiled path
        (64, 96, dict(block_q=32, block_k=64)),    # multi q/k tiles, online LSE
        (6, 20, {}),                               # irregular N -> fallback path
    ]
    for batch_size, dim, kwargs in cases:
        key, k1, k2 = jax.random.split(key, 3)
        emb_i = jax.random.normal(k1, (batch_size, dim), dtype=jnp.float32)
        emb_j = jax.random.normal(k2, (batch_size, dim), dtype=jnp.float32)

        loss = contrastive_loss_eli5(emb_i, emb_j, temperature, **kwargs)
        loss = jax.block_until_ready(loss)
        ref = nt_xent_ref(emb_i, emb_j, temperature)
        assert loss.shape == ()
        assert jnp.allclose(loss, ref, atol=1e-4, rtol=1e-4), \
            (batch_size, dim, loss, ref)

    print("KERNEL_OK")
</pallas_src>

<mosaic_0001>
module attributes {stable_mosaic.version = 11 : i64} {
  func.func @_nt_xent_tiled_kernel(%arg0: i32, %arg1: i32, %arg2: memref<8x128xf32, #tpu.memory_space<vmem>>, %arg3: memref<8x128xf32, #tpu.memory_space<vmem>>, %arg4: memref<16x128xf32, #tpu.memory_space<vmem>>, %arg5: memref<8x1xf32, #tpu.memory_space<vmem>>, %arg6: memref<8x128xf32, #tpu.memory_space<vmem>>, %arg7: memref<8x1xf32, #tpu.memory_space<vmem>>, %arg8: memref<8x1xf32, #tpu.memory_space<vmem>>, %arg9: memref<8x1xf32, #tpu.memory_space<vmem>>, %arg10: memref<8x1xf32, #tpu.memory_space<vmem>>) attributes {dimension_semantics = [#tpu.dimension_semantics<parallel>, #tpu.dimension_semantics<arbitrary>], iteration_bounds = array<i64: 2, 1>, scalar_prefetch = 0 : i64, scratch_operands = 5 : i64, tpu.core_type = #tpu.core_type<tc>, window_params = [{transform_indices = @transform_0, window_bounds = array<i64: 8, 128>}, {transform_indices = @transform_1, window_bounds = array<i64: 8, 128>}, {transform_indices = @transform_2, window_bounds = array<i64: 16, 128>}, {transform_indices = @transform_3, window_bounds = array<i64: 8, 1>}]} {
    %c0_i32 = arith.constant 0 : i32
    %0 = arith.cmpi eq, %arg1, %c0_i32 : i32
    %1 = arith.extui %0 : i1 to i32
    %c0_i32_0 = arith.constant 0 : i32
    %2 = arith.cmpi ne, %1, %c0_i32_0 : i32
    scf.if %2 {
      %c0_18 = arith.constant 0 : index
      %c0_19 = arith.constant 0 : index
      %33 = vector.load %arg2[%c0_18, %c0_19] : memref<8x128xf32, #tpu.memory_space<vmem>>, vector<8x128xf32>
      %34 = arith.mulf %33, %33 : vector<8x128xf32>
      %cst_20 = arith.constant dense<0.000000e+00> : vector<8xf32>
      %35 = vector.multi_reduction <add>, %34, %cst_20 [1] : vector<8x128xf32> to vector<8xf32>
      %36 = vector.shape_cast %35 : vector<8xf32> to vector<8x1xf32>
      %cst_21 = arith.constant 1.000000e-24 : f32
      %37 = vector.broadcast %cst_21 : f32 to vector<8x1xf32>
      %38 = arith.maximumf %36, %37 : vector<8x1xf32>
      %39 = math.rsqrt %38 : vector<8x1xf32>
      %cst_22 = arith.constant 2.000000e+00 : f32
      %40 = vector.broadcast %cst_22 : f32 to vector<8x1xf32>
      %41 = arith.mulf %39, %40 : vector<8x1xf32>
      %42 = vector.broadcast %41 : vector<8x1xf32> to vector<8x128xf32>
      %43 = arith.mulf %33, %42 : vector<8x128xf32>
      %c0_23 = arith.constant 0 : index
      %c0_24 = arith.constant 0 : index
      %44 = vector.load %arg6[%c0_23, %c0_24] : memref<8x128xf32, #tpu.memory_space<vmem>>, vector<8x128xf32>
      tpu.vector_store %arg6[%c0_23, %c0_24], %43 {strides = array<i32>} : memref<8x128xf32, #tpu.memory_space<vmem>>, vector<8x128xf32>,
      %cst_25 = arith.constant 2.000000e+00 : f32
      %45 = vector.broadcast %cst_25 : f32 to vector<8x1xf32>
      %46 = arith.mulf %36, %45 : vector<8x1xf32>
      %47 = arith.mulf %39, %39 : vector<8x1xf32>
      %48 = arith.mulf %46, %47 : vector<8x1xf32>
      %c0_26 = arith.constant 0 : index
      %c0_27 = arith.constant 0 : index
      %49 = vector.load %arg9[%c0_26, %c0_27] : memref<8x1xf32, #tpu.memory_space<vmem>>, vector<8x1xf32>
      tpu.vector_store %arg9[%c0_26, %c0_27], %48 {strides = array<i32>} : memref<8x1xf32, #tpu.memory_space<vmem>>, vector<8x1xf32>,
      %c0_28 = arith.constant 0 : index
      %c0_29 = arith.constant 0 : index
      %50 = vector.load %arg3[%c0_28, %c0_29] : memref<8x128xf32, #tpu.memory_space<vmem>>, vector<8x128xf32>
      %51 = arith.mulf %50, %50 : vector<8x128xf32>
      %cst_30 = arith.constant dense<0.000000e+00> : vector<8xf32>
      %52 = vector.multi_reduction <add>, %51, %cst_30 [1] : vector<8x128xf32> to vector<8xf32>
      %53 = vector.shape_cast %52 : vector<8xf32> to vector<8x1xf32>
      %cst_31 = arith.constant 1.000000e-24 : f32
      %54 = vector.broadcast %cst_31 : f32 to vector<8x1xf32>
      %55 = arith.maximumf %53, %54 : vector<8x1xf32>
      %56 = math.rsqrt %55 : vector<8x1xf32>
      %57 = arith.mulf %33, %50 : vector<8x128xf32>
      %cst_32 = arith.constant dense<0.000000e+00> : vector<8xf32>
      %58 = vector.multi_reduction <add>, %57, %cst_32 [1] : vector<8x128xf32> to vector<8xf32>
      %59 = vector.shape_cast %58 : vector<8xf32> to vector<8x1xf32>
      %60 = arith.mulf %39, %56 : vector<8x1xf32>
      %cst_33 = arith.constant 2.000000e+00 : f32
      %61 = vector.broadcast %cst_33 : f32 to vector<8x1xf32>
      %62 = arith.mulf %60, %61 : vector<8x1xf32>
      %63 = arith.mulf %59, %62 : vector<8x1xf32>
      %c0_34 = arith.constant 0 : index
      %c0_35 = arith.constant 0 : index
      %64 = vector.load %arg10[%c0_34, %c0_35] : memref<8x1xf32, #tpu.memory_space<vmem>>, vector<8x1xf32>
      tpu.vector_store %arg10[%c0_34, %c0_35], %63 {strides = array<i32>} : memref<8x1xf32, #tpu.memory_space<vmem>>, vector<8x1xf32>,
      %cst_36 = arith.constant 0xFF800000 : f32
      %65 = vector.broadcast %cst_36 : f32 to vector<8x1xf32>
      %c0_37 = arith.constant 0 : index
      %c0_38 = arith.constant 0 : index
      %66 = vector.load %arg7[%c0_37, %c0_38] : memref<8x1xf32, #tpu.memory_space<vmem>>, vector<8x1xf32>
      tpu.vector_store %arg7[%c0_37, %c0_38], %65 {strides = array<i32>} : memref<8x1xf32, #tpu.memory_space<vmem>>, vector<8x1xf32>,
      %cst_39 = arith.constant 0.000000e+00 : f32
      %67 = vector.broadcast %cst_39 : f32 to vector<8x1xf32>
      %c0_40 = arith.constant 0 : index
      %c0_41 = arith.constant 0 : index
      %68 = vector.load %arg8[%c0_40, %c0_41] : memref<8x1xf32, #tpu.memory_space<vmem>>, vector<8x1xf32>
      tpu.vector_store %arg8[%c0_40, %c0_41], %67 {strides = array<i32>} : memref<8x1xf32, #tpu.memory_space<vmem>>, vector<8x1xf32>,
    } else {
    }
    %c0 = arith.constant 0 : index
    %c0_1 = arith.constant 0 : index
    %3 = vector.load %arg4[%c0, %c0_1] : memref<16x128xf32, #tpu.memory_space<vmem>>, vector<16x128xf32>
    %4 = arith.mulf %3, %3 : vector<16x128xf32>
    %cst = arith.constant dense<0.000000e+00> : vector<16xf32>
    %5 = vector.multi_reduction <add>, %4, %cst [1] : vector<16x128xf32> to vector<16xf32>
    %6 = vector.shape_cast %5 : vector<16xf32> to vector<16x1xf32>
    %cst_2 = arith.constant 1.000000e-24 : f32
    %7 = vector.broadcast %cst_2 : f32 to vector<16x1xf32>
    %8 = arith.maximumf %6, %7 : vector<16x1xf32>
    %9 = math.rsqrt %8 : vector<16x1xf32>
    %10 = vector.broadcast %9 : vector<16x1xf32> to vector<16x128xf32>
    %11 = arith.mulf %3, %10 : vector<16x128xf32>
    %c0_3 = arith.constant 0 : index
    %c0_4 = arith.constant 0 : index
    %12 = vector.load %arg6[%c0_3, %c0_4] : memref<8x128xf32, #tpu.memory_space<vmem>>, vector<8x128xf32>
    %cst_5 = arith.constant dense<0.000000e+00> : vector<8x16xf32>
    %13 = tpu.matmul %12, %11, %cst_5 {dimension_numbers = #tpu.dot_dimension_numbers<[1], [1], [0], [0], [0, 0, 1, 0], [], []>} : vector<8x128xf32>, vector<16x128xf32>, vector<8x16xf32> -> vector<8x16xf32>
    %c0_6 = arith.constant 0 : index
    %c0_7 = arith.constant 0 : index
    %14 = vector.load %arg7[%c0_6, %c0_7] : memref<8x1xf32, #tpu.memory_space<vmem>>, vector<8x1xf32>
    %cst_8 = arith.constant dense<0xFF800000> : vector<8xf32>
    %15 = vector.multi_reduction <maximumf>, %13, %cst_8 [1] : vector<8x16xf32> to vector<8xf32>
    %16 = vector.shape_cast %15 : vector<8xf32> to vector<8x1xf32>
    %17 = arith.maximumf %14, %16 : vector<8x1xf32>
    %18 = arith.subf %14, %17 : vector<8x1xf32>
    %19 = math.exp %18 : vector<8x1xf32>
    %c0_9 = arith.constant 0 : index
    %c0_10 = arith.constant 0 : index
    %20 = vector.load %arg8[%c0_9, %c0_10] : memref<8x1xf32, #tpu.memory_space<vmem>>, vector<8x1xf32>
    %21 = arith.mulf %19, %20 : vector<8x1xf32>
    %22 = vector.broadcast %17 : vector<8x1xf32> to vector<8x16xf32>
    %23 = arith.subf %13, %22 : vector<8x16xf32>
    %24 = math.exp %23 : vector<8x16xf32>
    %cst_11 = arith.constant dense<0.000000e+00> : vector<8xf32>
    %25 = vector.multi_reduction <add>, %24, %cst_11 [1] : vector<8x16xf32> to vector<8xf32>
    %26 = vector.shape_cast %25 : vector<8xf32> to vector<8x1xf32>
    %27 = arith.addf %21, %26 : vector<8x1xf32>
    %c0_12 = arith.constant 0 : index
    %c0_13 = arith.constant 0 : index
    %28 = vector.load %arg8[%c0_12, %c0_13] : memref<8x1xf32, #tpu.memory_space<vmem>>, vector<8x1xf32>
    tpu.vector_store %arg8[%c0_12, %c0_13], %27 {strides = array<i32>} : memref<8x1xf32, #tpu.memory_space<vmem>>, vector<8x1xf32>,
    %c0_14 = arith.constant 0 : index
    %c0_15 = arith.constant 0 : index
    %29 = vector.load %arg7[%c0_14, %c0_15] : memref<8x1xf32, #tpu.memory_space<vmem>>, vector<8x1xf32>
    tpu.vector_store %arg7[%c0_14, %c0_15], %17 {strides = array<i32>} : memref<8x1xf32, #tpu.memory_space<vmem>>, vector<8x1xf32>,
    %c0_i32_16 = arith.constant 0 : i32
    %30 = arith.cmpi eq, %arg1, %c0_i32_16 : i32
    %31 = arith.extui %30 : i1 to i32
    %c0_i32_17 = arith.constant 0 : i32
    %32 = arith.cmpi ne, %31, %c0_i32_17 : i32
    scf.if %32 {
      %c0_18 = arith.constant 0 : index
      %c0_19 = arith.constant 0 : index
      %33 = vector.load %arg7[%c0_18, %c0_19] : memref<8x1xf32, #tpu.memory_space<vmem>>, vector<8x1xf32>
      %c0_20 = arith.constant 0 : index
      %c0_21 = arith.constant 0 : index
      %34 = vector.load %arg8[%c0_20, %c0_21] : memref<8x1xf32, #tpu.memory_space<vmem>>, vector<8x1xf32>
      %c0_22 = arith.constant 0 : index
      %c0_23 = arith.constant 0 : index
      %35 = vector.load %arg9[%c0_22, %c0_23] : memref<8x1xf32, #tpu.memory_space<vmem>>, vector<8x1xf32>
      %36 = arith.subf %35, %33 : vector<8x1xf32>
      %37 = math.exp %36 : vector<8x1xf32>
      %38 = arith.subf %34, %37 : vector<8x1xf32>
      %39 = math.log %38 : vector<8x1xf32>
      %40 = arith.addf %39, %33 : vector<8x1xf32>
      %c0_24 = arith.constant 0 : index
      %c0_25 = arith.constant 0 : index
      %41 = vector.load %arg10[%c0_24, %c0_25] : memref<8x1xf32, #tpu.memory_space<vmem>>, vector<8x1xf32>
      %42 = arith.subf %40, %41 : vector<8x1xf32>
      %c0_26 = arith.constant 0 : index
      %c0_27 = arith.constant 0 : index
      %43 = vector.load %arg5[%c0_26, %c0_27] : memref<8x1xf32, #tpu.memory_space<vmem>>, vector<8x1xf32>
      tpu.vector_store %arg5[%c0_26, %c0_27], %42 {strides = array<i32>} : memref<8x1xf32, #tpu.memory_space<vmem>>, vector<8x1xf32>,
    } else {
    }
    return
  }
  func.func @transform_0(%arg0: i32, %arg1: i32) -> (i32, i32) {
    %c0_i32 = arith.constant 0 : i32
    %c0_i32_0 = arith.constant 0 : i32
    return %arg0, %c0_i32 : i32, i32
  }
  func.func @transform_1(%arg0: i32, %arg1: i32) -> (i32, i32) {
    %c1_i32 = arith.constant 1 : i32
    %0 = arith.addi %arg0, %c1_i32 : i32
    %c2_i32 = arith.constant 2 : i32
    %c0_i32 = arith.constant 0 : i32
    %1 = arith.cmpi eq, %c2_i32, %c0_i32 : i32
    %c1_i32_0 = arith.constant 1 : i32
    %2 = arith.select %1, %c1_i32_0, %c2_i32 : i32
    %3 = arith.remsi %0, %2 : i32
    %c0_i32_1 = arith.constant 0 : i32
    %4 = arith.cmpi ne, %3, %c0_i32_1 : i32
    %c0_i32_2 = arith.constant 0 : i32
    %5 = arith.cmpi slt, %3, %c0_i32_2 : i32
    %c0_i32_3 = arith.constant 0 : i32
    %6 = arith.cmpi slt, %2, %c0_i32_3 : i32
    %7 = arith.xori %5, %6 : i1
    %8 = arith.andi %7, %4 : i1
    %9 = arith.addi %3, %2 : i32
    %10 = arith.select %8, %9, %3 : i32
    %c0_i32_4 = arith.constant 0 : i32
    %c0_i32_5 = arith.constant 0 : i32
    return %10, %c0_i32_4 : i32, i32
  }
  func.func @transform_2(%arg0: i32, %arg1: i32) -> (i32, i32) {
    %c0_i32 = arith.constant 0 : i32
    %c0_i32_0 = arith.constant 0 : i32
    return %arg1, %c0_i32 : i32, i32
  }
  func.func @transform_3(%arg0: i32, %arg1: i32) -> (i32, i32) {
    %c0_i32 = arith.constant 0 : i32
    %c0_i32_0 = arith.constant 0 : i32
    return %arg0, %c0_i32 : i32, i32
  }
}

</mosaic_0001>

<bundles_post_ra>
// kernel: tpu_custom_call.1
= control target key start
LH: loop header
LB: loop body
LE: loop exit
PB: predicated region body
PF: predicated region fallthrough
CT: control target
= control target key end

     0   :  { %s1222_s0 = inlined_call_operand.hbm [shape: f32[16,128], index: 0, kind: input, shape index: {}]   ;;  %s1223_s1 = inlined_call_operand.hbm [shape: f32[16,128], index: 1, kind: input, shape index: {}]   ;;  %s1224_s2 = inlined_call_operand.hbm [shape: f32[16,128], index: 2, kind: input, shape index: {}]   ;;  %s1225_s3 = inlined_call_operand.vmem [shape: f32[16,1], index: 3, kind: output, shape index: {}]  }
   0x1   :  { %1234 = sst [smem:[#allocation15_spill]] %s1224_s2 }
   0x2   :  { %8 = vsyncpa [#allocation8], 0 }
   0x3   :  { %10 = vsyncpa [#allocation8 + $0x1], 0 }
   0x4   :  { %11 = vsyncpa [#allocation10], 0 }
   0x5   :  { %13 = vsyncpa [#allocation10 + $0x1], 0  ;;  %s936_s12 = smov 0   ;;  %s938_s13 = smov 0  }
   0x6   :  { %s940_s14 = smov 0   ;;  %s942_s15 = smov 0  }
   0x7   :  { %s944_s16 = smov 0   ;;  %s946_s17 = smov 0  }
   0x8   :  { %s948_s18 = smov 0   ;;  %s950_s19 = smov 0  }
   0x9   :  { %s952_s20 = smov 0  }
   0xa LB: > { %s1230_s21 = sadd.s32 4294967295, %s904_s20   ;;  %p585_p0 = scmp.ge.s32.totalorder %s904_s20, 1  ;;  %s904_s20 = sphi %s952_s20, %s19_s20   ;;  %s900_s19 = sphi %s950_s19, %s1258_s19   ;;  %s896_s18 = sphi %s948_s18, %s1257_s18   ;;  %s892_s17 = sphi %s946_s17, %s1256_s17   ;;  %s888_s16 = sphi %s944_s16, %s1255_s16   ;;  %s884_s15 = sphi %s942_s15, %s1254_s15   ;;  %s880_s14 = sphi %s940_s14, %s1253_s14   ;;  %s876_s13 = sphi %s938_s13, %s1252_s13   ;;  %s872_s12 = sphi %s936_s12, %s1251_s12  }
   0xb   : > { %p985_p1 = scmp.eq.s32.totalorder %s1230_s21, 0  ;;  %p166_p2 = scmp.lt.s32.totalorder %s904_s20, 3 }
   0xc   : > { %s906_s24 = smov [#allocation11]   ;;  %s1238_s2 = sld [smem:[#allocation15_spill]] }
   0xd   : > { %s1235_s22 = scalar_select %p985_p1, 1, 0 }
   0xe   : > { %p990_p3 = pnand %p585_p0, %p166_p2  ;;  %s181_s25 = sshll.u32 %s906_s24, 4  ;;  %s182_s25 = int_to_ptr.vmem [resolvable:$true] %s181_s25 }
  0x10   : > { %s1236_s23 = scalar_select %p990_p3, 1, 0 }
  0x11   : > { %p623_p4 = pneg %p990_p3 }
  0x12   : > { %s734_s29 = scalar_lea.hbm %s1238_s2, 256 }
  0x13   : > { %p998_p5 = pnand %p623_p4, %p985_p1  ;;  %p735_p6 = scmp.ne.s32.totalorder %s1238_s2, %s734_s29 }
  0x14   : > { %p741_p10 = scmp.lt.u32.totalorder %s734_s29, %s1238_s2 }
  0x15   : > { %p736_p7 = pneg %p998_p5 }
  0x17   : > { %p737_p8 = pnand %p736_p7, %p735_p6 }
  0x19   : > { %p738_p9 = pneg %p737_p8 }
  0x1b   : > { %p743_p11 = pnand %p741_p10, %p738_p9 }
  0x1d   : > { %746 = shalt.err (!%p743_p11)
}
  0x1e   : > { %s747_s7 = scalar_lea.vmem %s182_s25, 256  ;;  %p755_p2 = scmp.lt.s32.totalorder %s182_s25, %s182_s25 }
  0x1f   : > { %p748_p12 = scmp.ne.s32.totalorder %s182_s25, %s747_s7  ;;  %p756_p4 = scmp.lt.s32.totalorder %s747_s7, %s747_s7 }
  0x21   : > { %p750_p13 = pnand %p748_p12, %p736_p7  ;;  %p757_p3 = por %p756_p4, %p755_p2 }
  0x23   : > { %p751_p0 = pneg %p750_p13 }
  0x25   : > { %p758_p1 = pnand %p757_p3, %p751_p0 }
  0x27   : > { %761 = shalt.err (!%p758_p1)
}
  0x28   : > { %s907_s8 = smov 128   ;;  %s908_s9 = smov 8  }
  0x29   : > { %626 = dma.hbm_to_vmem [thread:$0]  (!%p998_p5), %s1238_s2, 256, %s182_s25, [#allocation10], %s907_s8, %s907_s8, %s908_s9  }
  0x2a   : > { %s31_s24 = sadd.s32 1, %s900_s19  ;;  %s38_s27 = sadd.s32 1, %s892_s17 }
  0x2b   : > { %p33_p1 = scmp.ge.s32.totalorder %s31_s24, 2  ;;  %p45_p3 = scmp.ne.s32.totalorder %s892_s17, %s888_s16 }
  0x2c   : > { %p1232_p6 = scmp.eq.s32.totalorder %s904_s20, 0  ;;  %p51_p8 = scmp.ne.s32.totalorder %s888_s16, %s884_s15 }
  0x2d   : > { %s1023_s28 = scalar_select %p33_p1, 0, %s31_s24  }
  0x2e   : > { %p1027_p7 = por %p1232_p6, %p45_p3  ;;  %p1240_p9 = scmp.ne.s32.totalorder %s1235_s22, 0 }
  0x2f   : > { %s35_s26 = ssub.s32 %s900_s19, %s1023_s28  ;;  %s63_s30 = ssub.s32 0, %s31_s24 }
  0x30   : > { %p36_p5 = scmp.eq.s32.totalorder %s35_s26, 0  ;;  %p1037_p10 = por %p1240_p9, %p51_p8 }
  0x31   : > { %s74_s4 = sadd.s32 1, %s1023_s28  ;;  %s1045_s6 = smin.u32 %s63_s30, %s31_s24 }
  0x32   : > { %s1241_s25 = scalar_select %p1037_p10, 1, 0 }
  0x33   : > { %s1043_s5 = scalar_select %p36_p5, %s892_s17, %s38_s27  }
  0x34   : > { %s76_s7 = ssub.s32 0, %s74_s4  ;;  %p1231_p11 = scmp.lt.s32.totalorder %s904_s20, 2 }
  0x35   : > { %s582_s8 = smin.u32 %s76_s7, %s74_s4  ;;  %s195_s9 = sand.u32 1, %s892_s17  }
  0x36   : > { %s1049_s15 = sand.u32 1, %s582_s8   ;;  %s588_s10 = sshll.u32 %s195_s9, 3 }
  0x37   : > { %s589_s11 = sshll.u32 %s900_s19, 7  ;;  %s199_s27 = scalar_lea.vmem [#allocation7], %s588_s10 }
  0x38   : > { %s1055_s2 = scalar_lea.hbm %s1222_s0, %s589_s11  ;;  %s206_s24 = sshll.u32 %s199_s27, 4  ;;  %s1057_s24 = int_to_ptr.vmem [resolvable:$true] %s206_s24 }
  0x39   : > { %p1063_p12 = pnand %p1231_p11, %p1027_p7  ;;  %s196_s4 = scalar_lea.sflag [#allocation8], %s195_s9 }
  0x3a   : > { %s762_s21 = scalar_lea.hbm %s1055_s2, 128  ;;  %s767_s29 = scalar_lea.hbm %s1222_s0, 256 }
  0x3b   : > { %p763_p13 = scmp.ne.s32.totalorder %s1055_s2, %s762_s21  ;;  %p764_p0 = pneg %p1063_p12 }
  0x3c   : > { %p768_p1 = scmp.lt.u32.totalorder %s1055_s2, %s1222_s0  ;;  %p769_p3 = scmp.lt.u32.totalorder %s767_s29, %s762_s21 }
  0x3d   : > { %p765_p2 = pnand %p764_p0, %p763_p13  ;;  %p771_p8 = scmp.lt.u32.totalorder %s762_s21, %s1055_s2 }
  0x3e   : > { %p770_p7 = por %p769_p3, %p768_p1 }
  0x3f   : > { %p766_p4 = pneg %p765_p2 }
  0x40   : > { %p772_p5 = por %p771_p8, %p770_p7 }
  0x42   : > { %p773_p11 = pnand %p772_p5, %p766_p4 }
  0x44   : > { %776 = shalt.err (!%p773_p11)
}
  0x45   : > { %s777_s9 = scalar_lea.vmem %s1057_s24, 128  ;;  %s909_s26 = smov [#allocation7]  }
  0x46   : > { %p778_p13 = scmp.ne.s32.totalorder %s1057_s24, %s777_s9  ;;  %s782_s27 = sshll.u32 %s909_s26, 4  ;;  %s783_s27 = int_to_ptr.vmem [resolvable:$false] %s782_s27 }
  0x47   : > { %s784_s7 = scalar_lea.vmem %s783_s27, 256  ;;  %p785_p10 = scmp.lt.s32.totalorder %s1057_s24, %s783_s27 }
  0x48   : > { %p780_p2 = pnand %p778_p13, %p764_p0  ;;  %p786_p1 = scmp.lt.s32.totalorder %s784_s7, %s777_s9 }
  0x4a   : > { %p781_p6 = pneg %p780_p2  ;;  %p787_p3 = por %p786_p1, %p785_p10 }
  0x4c   : > { %p788_p7 = pnand %p787_p3, %p781_p6 }
  0x4e   : > { %791 = shalt.err (!%p788_p7)
}
  0x4f   : > { %630 = dma.hbm_to_vmem [thread:$0]  (!%p1063_p12), %s1055_s2, 128, %s1057_s24, %s196_s4  }
  0x50   : > { %s65_s21 = sand.u32 1, %s1045_s6   ;;  %s90_s8 = sadd.s32 1, %s880_s14 }
  0x51   : > { %p581_p6 = scmp.lt.s32.totalorder %s65_s21, 0  ;;  %s72_s30 = sadd.s32 2, %s65_s21 }
  0x52   : > { %p584_p10 = scmp.lt.s32.totalorder %s1049_s15, 0  ;;  %s85_s29 = sadd.s32 2, %s1049_s15 }
  0x53   : > { %s1260_s30 = smov (!%p581_p6, %s72_s30), %s65_s21  ;;  %p97_p11 = scmp.ne.s32.totalorder %s880_s14, %s876_s13 }
  0x54   : > { %s1262_s29 = smov (!%p584_p10, %s85_s29), %s1049_s15  ;;  %p103_p0 = scmp.ne.s32.totalorder %s876_s13, %s872_s12 }
  0x55   : > { %s87_s10 = ssub.s32 %s1260_s30, %s1262_s29  ;;  %s213_s11 = sand.u32 1, %s904_s20  }
  0x56   : > { %p88_p4 = scmp.eq.s32.totalorder %s87_s10, 0  ;;  %p1243_p8 = scmp.eq.s32.totalorder %s904_s20, 0 }
  0x57   : > { %p1106_p12 = por %p103_p0, %p1240_p9  ;;  %s215_s24 = sand.u32 1, %s880_s14  }
  0x58   : > { %p99_p5 = por %p97_p11, %p1243_p8  ;;  %s594_s4 = sshll.u32 %s1260_s30, 7 }
  0x59   : > { %s1111_s6 = scalar_select %p88_p4, %s880_s14, %s90_s8  }
  0x5a   : > { %s590_s9 = sshll.u32 %s215_s24, 3  ;;  %s1117_s15 = scalar_lea.hbm %s1223_s1, %s594_s4 }
  0x5b   : > { %p1245_p13 = scmp.lt.s32.totalorder %s904_s20, 2  ;;  %s217_s7 = scalar_lea.vmem [#allocation9], %s590_s9 }
  0x5c   : > { %s237_s21 = sshll.u32 %s217_s7, 4  ;;  %s214_s8 = scalar_lea.sflag [#allocation10], %s213_s11  ;;  %s1125_s21 = int_to_ptr.vmem [resolvable:$true] %s237_s21 }
  0x5d   : > { %p1121_p2 = pnand %p1245_p13, %p99_p5  ;;  %s792_s30 = scalar_lea.hbm %s1117_s15, 128 }
  0x5e   : > { %p793_p9 = scmp.ne.s32.totalorder %s1117_s15, %s792_s30  ;;  %s797_s24 = scalar_lea.hbm %s1223_s1, 256 }
  0x5f   : > { %p794_p1 = pneg %p1121_p2  ;;  %p798_p6 = scmp.lt.u32.totalorder %s1117_s15, %s1223_s1 }
  0x60   : > { %p799_p10 = scmp.lt.u32.totalorder %s797_s24, %s792_s30  ;;  %p801_p0 = scmp.lt.u32.totalorder %s792_s30, %s1117_s15 }
  0x61   : > { %p795_p3 = pnand %p794_p1, %p793_p9 }
  0x62   : > { %p800_p11 = por %p799_p10, %p798_p6 }
  0x63   : > { %p796_p7 = pneg %p795_p3 }
  0x64   : > { %p802_p4 = por %p801_p0, %p800_p11 }
  0x66   : > { %p803_p8 = pnand %p802_p4, %p796_p7 }
  0x68   : > { %806 = shalt.err (!%p803_p8)
}
  0x69   : > { %s807_s11 = scalar_lea.vmem %s1125_s21, 128  ;;  %s910_s9 = smov [#allocation9]  }
  0x6a   : > { %p808_p5 = scmp.ne.s32.totalorder %s1125_s21, %s807_s11  ;;  %s812_s27 = sshll.u32 %s910_s9, 4  ;;  %s813_s27 = int_to_ptr.vmem [resolvable:$false] %s812_s27 }
  0x6b   : > { %s814_s7 = scalar_lea.vmem %s813_s27, 256  ;;  %p815_p3 = scmp.lt.s32.totalorder %s1125_s21, %s813_s27 }
  0x6c   : > { %p810_p13 = pnand %p808_p5, %p794_p1  ;;  %p816_p6 = scmp.lt.s32.totalorder %s814_s7, %s807_s11 }
  0x6e   : > { %p811_p9 = pneg %p810_p13  ;;  %p817_p10 = por %p816_p6, %p815_p3 }
  0x70   : > { %p818_p11 = pnand %p817_p10, %p811_p9 }
  0x72   : > { %821 = shalt.err (!%p818_p11)
}
  0x73   : > { %633 = dma.hbm_to_vmem [thread:$0]  (!%p1121_p2), %s1117_s15, 128, %s1125_s21, %s214_s8  }
  0x74   : > { %p1247_p7 = scmp.ne.s32.totalorder %s1236_s23, 0 }
  0x75   : > { %s248_s30 = sand.u32 (!%p1247_p7), 1, %s888_s16   ;;  %p1248_p1 = scmp.ne.s32.totalorder (!%p1247_p7), %s1241_s25, 0 }
  0x76   : > { %246 = sbr.rel (%p1247_p7) target bundleno = 979 (0x3d3), region = 32  ;;  %s596_s29 = sshll.u32 (!%p1247_p7), %s248_s30, 3 }
  0x77   : > { %s249_s10 = scalar_lea.sflag (!%p1247_p7), [#allocation8], %s248_s30  ;;  %s252_s24 = scalar_lea.vmem (!%p1247_p7), [#allocation7], %s596_s29 }
  0x7d   : > { %859 = dma.done.wait (%p1248_p1), %s249_s10, 128  }
  0x7e   : > { %861 = vsyncadd (%p1248_p1), %s249_s10, 4294967168  ;;  %s1249_s4 = sadd.s32 4294967295, %s904_s20   ;;  %s259_s15 = sand.u32 1, %s876_s13  }
  0x7f   : > { %s257_s12 = sand.u32 1, %s1249_s4   ;;  %s1162_s21 = sshll.u32 %s259_s15, 3 }
  0x80   : > { %s258_s23 = scalar_lea.sflag [#allocation10], %s257_s12  ;;  %s261_s8 = scalar_lea.vmem [#allocation9], %s1162_s21 }
  0x81   : > { %863 = dma.done.wait (%p1106_p12), %s258_s23, 128  }
  0x82   : > { %865 = vsyncadd (%p1106_p12), %s258_s23, 4294967168  ;;  %p1250_p2 = scmp.ne.s32.totalorder %s1235_s22, 0 }
  0x84   : > { %867 = dma.done.wait (%p1250_p2), [#allocation10], 256  }
  0x85   : > { %869 = vsyncadd (%p1250_p2), [#allocation10], 4294967040  ;;  %v343_v0 = vld [vmem:[#allocation11] sm:$0xff]  ;;  %v344_v2 = vld [vmem:[#allocation11 + $0x8] sm:$0xff]  ;;  %v911_v6 = vmov 0.0|0.0   ;;  %vm326_vm0 = vcmask 7168  }
  0x86   : > { %v1173_v1 = vld [vmem:[%s252_s24] sm:$0xff]  ;;  %v345_v3 = vmul.f32 %v343_v0, %v343_v0  ;;  %v346_v5 = vmul.f32 %v344_v2, %v344_v2  ;;  %612 = vmatprep.subr.bf16.mxu0 %v911_v6  ;;  %v912_v7 = vmov 0.0   ;;  %vm913_vm1 = vmmov 0   ;;  %v328_v26 = vld [vmem:[%s261_s8] sm:$0xff]  ;;  %p306_p12 = scmp.lt.s32.totalorder %s896_s18, 1 }
  0x87   : > { %v315_v4 = vmul.f32 %v1173_v1, %v1173_v1  ;;  %342 = vst.msk [vmem:[#allocation4] sm:$0xff] %vm326_vm0, %v912_v7  ;;  %609 = vmatprep.mubr.msk.f32.mxu0 %vm913_vm1, %v912_v7  ;;  %v914_v25 = vmov -inf   ;;  %vm429_vm2 = vcmask 130048   ;;  %v329_v30 = vmul.f32 %v328_v26, %v328_v26 }
  0x88   : > { %347 = vadd.xlane.f32.xlu0 %v345_v3  ;;  %341 = vst.msk [vmem:[#allocation3] sm:$0xff] %vm326_vm0, %v914_v25  ;;  %v915_v31 = vmov 0   ;;  %v334_v41 = vmul.f32 %v328_v26, %v1173_v1  ;;  %s1264_s18 = smov (!%p306_p12, %s896_s18), 1 }
  0x89   : > { %316 = vadd.xlane.f32.xlu1 %v315_v4  ;;  %717 = vset.pattern.permute.xlu0 %v915_v31  ;;  %s599_s22 = sshll.u32 %s1264_s18, 3 }
  0x8a   : > { %s309_s26 = scalar_lea.vmem %s1225_s3, %s599_s22 }
  0x8c   : > { %349 = vadd.xlane.f32.xlu0 %v346_v5 }
  0x8e   : > { %v437_v50 = vld [vmem:[#allocation4] sm:$0xff] }
  0x8f   : > { %v428_v32 = vld [vmem:[#allocation3] sm:$0xff] }
 0x115   : > { %v348_v8 = vpop.xlane.xlu0 %347 }
 0x116   : > { %v317_v9 = vpop.xlane.xlu1 %316  ;;  %v351_v10 = vmax.f32 %v348_v8, 1e-24 }
 0x117   : > { %v318_v11 = vmax.f32 %v317_v9, 1e-24  ;;  %v323_v16 = vmul.f32 2.0, %v317_v9 }
 0x119   : > { %718 = vrsqrt.f32 %v318_v11  ;;  %v350_v12 = vpop.xlane.xlu0 %349 }
 0x11a   : > { %720 = vrsqrt.f32 %v351_v10  ;;  %v352_v13 = vmax.f32 %v350_v12, 1e-24 }
 0x11c   : > { %722 = vrsqrt.f32 %v352_v13 }
 0x123   : > { %v719_v14 = vpop.eup %718 }
 0x124   : > { %v721_v15 = vpop.eup %720  ;;  %v324_v17 = vmul.f32 %v719_v14, %v719_v14  ;;  %v320_v23 = vmul.f32 2.0, %v719_v14 }
 0x125   : > { %v355_v20 = vmul.f32 %v721_v15, %v343_v0 }
 0x126   : > { %v723_v18 = vpop.eup %722  ;;  %v325_v19 = vmul.f32 %v324_v17, %v323_v16  ;;  %v321_v24 = vmul.f32 %v320_v23, %v1173_v1 }
 0x127   : > { %v356_v21 = vmul.f32 %v723_v18, %v344_v2 }
 0x128   : > { %327 = vst.msk [vmem:[#allocation5] sm:$0xff] %vm326_vm0, %v325_v19 }
 0x129   : > { %v613_v22 = vpack.c.bf16 %v356_v21, %v355_v20 }
 0x12b   : > { %614 = vmatpush3.bf16.xpose.msra.mxu0 %v613_v22 }
 0x12f   : > { %v459_v46 = vld [vmem:[#allocation5] sm:$0xff] }
 0x132   : > { %610 = vmatmul.mubr.f32.vlgmr.msra.gmra.mrb[0].mxu0 %v321_v24 }
 0x205   : > { %v424_v27 = vpop.f32.mrb[0].mxu0 }
 0x206   : > { %v611_v28 = vpop.f32.mrb[1].mxu0  ;;  %v430_v29 = vsel %vm429_vm2, %v424_v27, -inf }
 0x207   : > { %431 = vmax.xlane.f32.xlu1 %v430_v29 }
 0x20b   : > { %330 = vadd.xlane.f32.xlu1 %v329_v30 }
 0x294   : > { %v432_v33 = vpop.xlane.xlu1 %431 }
 0x295   : > { %v433_v34 = vmax.f32 %v428_v32, %v432_v33 }
 0x297   : > { %v434_v35 = vsub.f32 %v428_v32, %v433_v34  ;;  %453 = vst.msk [vmem:[#allocation3] sm:$0xff] %vm326_vm0, %v433_v34  ;;  %441 = vperm.xlu0 %717, %v433_v34  }
 0x298   : > { %v331_v42 = vpop.xlane.xlu1 %330 }
 0x299   : > { %v435_v43 = vmul.f32 1.442695, %v434_v35  ;;  %v332_v44 = vmax.f32 %v331_v42, 1e-24 }
 0x29e   : > { %v457_v45 = vld [vmem:[#allocation3] sm:$0xff] }
 0x29f   : > { %v460_v47 = vsub.f32 %v459_v46, %v457_v45 }
 0x2a1   : > { %v461_v51 = vmul.f32 1.442695, %v460_v47 }
 0x316   : > { %v442_v36 = vpop.permute.xlu0 %441 }
 0x317   : > { %v444_v37 = vsub.f32 %v424_v27, %v442_v36 }
 0x319   : > { %v445_v38 = vmul.f32 1.442695, %v444_v37 }
 0x31b   : > { %724 = vpow2.f32 %v445_v38 }
 0x31c   : > { %726 = vpow2.f32 %v435_v43 }
 0x31d   : > { %728 = vrsqrt.f32 %v332_v44 }
 0x31e   : > { %730 = vpow2.f32 %v461_v51 }
 0x325   : > { %v725_v39 = vpop.eup %724 }
 0x326   : > { %v447_v40 = vsel %vm429_vm2, %v725_v39, 0.0  ;;  %v727_v48 = vpop.eup %726 }
 0x327   : > { %448 = vadd.xlane.f32.xlu1 %v447_v40  ;;  %v729_v49 = vpop.eup %728  ;;  %v438_v52 = vmul.f32 %v727_v48, %v437_v50 }
 0x328   : > { %v337_v53 = vmul.f32 %v729_v49, %v719_v14  ;;  %v731_v59 = vpop.eup %730 }
 0x32a   : > { %v338_v56 = vmul.f32 2.0, %v337_v53 }
 0x32b   : > { %335 = vadd.xlane.f32.xlu1 %v334_v41 }
 0x3b4   : > { %v449_v54 = vpop.xlane.xlu1 %448 }
 0x3b5   : > { %v450_v55 = vadd.f32 %v449_v54, %v438_v52 }
 0x3b7   : > { %452 = vst.msk [vmem:[#allocation4] sm:$0xff] %vm326_vm0, %v450_v55 }
 0x3b8   : > { %v336_v57 = vpop.xlane.xlu1 %335 }
 0x3b9   : > { %v339_v58 = vmul.f32 %v338_v56, %v336_v57 }
 0x3bb   : > { %340 = vst.msk [vmem:[#allocation6] sm:$0xff] %vm326_vm0, %v339_v58 }
 0x3be   : > { %v458_v60 = vld [vmem:[#allocation4] sm:$0xff] }
 0x3bf   : > { %v463_v61 = vsub.f32 %v458_v60, %v731_v59 }
 0x3c1   : > { %732 = vlog2.f32 %v463_v61 }
 0x3c2   : > { %v467_v1 = vld [vmem:[#allocation6] sm:$0xff] }
 0x3cb   : > { %v733_v62 = vpop.eup %732 }
 0x3cc   : > { %v465_v63 = vmul.f32 0.6931472, %v733_v62 }
 0x3ce   : > { %v466_v0 = vadd.f32 %v465_v63, %v457_v45 }
 0x3d0   : > { %v468_v2 = vsub.f32 %v466_v0, %v467_v1 }
 0x3d2   : > { %469 = vst.msk [vmem:[%s309_s26] sm:$0xff] %vm326_vm0, %v468_v2 }
 0x3d3 PF: > { %s19_s20 = sadd.s32 1, %s904_s20   ;;  %s1251_s12 = smov %s876_s13 }
 0x3d4   : > { %p16_p0 = scmp.ge.s32.totalorder %s19_s20, 4   ;;  %s1252_s13 = smov %s880_s14 }
 0x3d5   : > { %s1253_s14 = smov %s1111_s6  ;;  %s1254_s15 = smov %s888_s16 }
 0x3d6   : > { %s1255_s16 = smov %s892_s17  ;;  %s1256_s17 = smov %s1043_s5 }
 0x3d7   : > { %s1257_s18 = smov %s900_s19  ;;  %s1258_s19 = smov %s1023_s28 }
 0x3d8   :  { %18 = sbr.rel (!%p16_p0) target bundleno = 10 (0xa), region = 98 }
 0x3df   :  { %489 = vsyncpa [#allocation8], 1 }
 0x3e0   :  { %491 = vsyncpa [#allocation8 + $0x1], 1 }
 0x3e1   :  { %492 = vsyncpa [#allocation10], 1 }
 0x3e2   :  { %494 = vsyncpa [#allocation10 + $0x1], 1 }

</bundles_post_ra>
